<compile_context>
chip_gen: v5e
topology: v5e:2x2
jax: 0.10.0
libtpu: 0.0.40
codegen_flags: <defaults>
</compile_context>

<pallas_src>
import functools

import jax
import jax.numpy as jnp
from jax import lax
from jax.experimental import pallas as pl
from jax.experimental.pallas import tpu as pltpu


def _round_up(x: int, m: int) -> int:
    return ((x + m - 1) // m) * m


def _vmem_capacity_bytes() -> int:
    # Generation-aware budget: ~128 MiB on v5e/v6e, 64 MiB per TC on v7x.
    try:
        return int(pltpu.get_tpu_info().vmem_capacity_bytes)
    except Exception:
        return 64 * 1024 * 1024  # conservative fallback (v7x per-TC VMEM)


# -----------------------------------------------------------------------------
# Path 1: small/medium float table -- resident-table one-hot gather on the MXU.
# -----------------------------------------------------------------------------
def _glo_onehot_kernel(idx_ref, table_ref, out_ref, *, precision):
    # idx_ref:   (TB, 1)      int32        -- indices for this batch tile
    # table_ref: (n_pad, Fp)  table dtype  -- whole padded table, resident in VMEM
    # out_ref:   (TB, Fp)     table dtype  -- gathered rows (Fp % 128 == 0 -> lane-dense)
    n = table_ref.shape[0]
    tb = out_ref.shape[0]
    # TODO(synk): for mid-size n (>= ~512) an in-kernel VMEM gather (jnp.take) would
    # avoid the O(TB*n) VPU one-hot build; kept the one-hot here (robust lowering).
    row_ids = lax.broadcasted_iota(jnp.int32, (tb, n), dimension=1)
    onehot = (row_ids == idx_ref[...]).astype(table_ref.dtype)        # (TB, n_pad)
    out_ref[...] = jnp.dot(
        onehot, table_ref[...],
        preferred_element_type=jnp.float32,
        precision=precision,
    ).astype(out_ref.dtype)


def _forward_onehot(table, idx, *, vmem_cap):
    n, f = table.shape
    b = idx.shape[0]
    itemsize = jnp.dtype(table.dtype).itemsize

    # Lane-dense output: pad features to a multiple of 128 (masked partial stores are
    # a ~4x lever).  Align the contraction dim to the dtype's packed sublane count
    # (8 f32 / 16 bf16 / 32 int8).  Padding is skipped entirely when already aligned;
    # callers doing many forwards should pre-pad the table once at parameter-prep time.
    fp = _round_up(f, 128)
    sub = max(8, 32 // itemsize)
    n_pad = _round_up(n, sub)
    if (n_pad, fp) != (n, f):
        table_p = jnp.pad(table, ((0, n_pad - n), (0, fp - f)))
    else:
        table_p = table

    # Adaptive batch tile: large enough that the output tile (TB*Fp*itemsize) is
    # >= ~512 KiB so grid-step overhead (~0.35us) is amortized, capped so the
    # (TB, n_pad) one-hot intermediate stays <= ~2 MiB, never larger than the batch.
    tb = 256
    if tb * fp * itemsize < 512 * 1024:
        tb = min(1024, _round_up(-(-512 * 1024 // (fp * itemsize)), 128))
    tb = min(tb, max(8, (2 * 1024 * 1024 // (n_pad * 4)) // 8 * 8))
    tb = max(8, min(tb, _round_up(b, 8)))
    b_pad = _round_up(b, tb)
    idx_p = jnp.pad(idx, (0, b_pad - b)).reshape(b_pad, 1)

    # Exact gather for f32 tables (multi-pass matmul); bf16 is exact in one pass.
    precision = (lax.Precision.HIGHEST
                 if table.dtype == jnp.float32 else lax.Precision.DEFAULT)

    out = pl.pallas_call(
        functools.partial(_glo_onehot_kernel, precision=precision),
        out_shape=jax.ShapeDtypeStruct((b_pad, fp), table.dtype),
        grid_spec=pltpu.PrefetchScalarGridSpec(
            num_scalar_prefetch=0,
            grid=(b_pad // tb,),
            in_specs=[
                # Index tile: TB*4 bytes per step, amortized over TB output rows.
                pl.BlockSpec((tb, 1), lambda i: (i, 0)),
                # Whole padded table resident in VMEM: copied in once, single buffer
                # (no per-step DMA, no wasted double buffer for a constant operand).
                pl.BlockSpec(memory_space=pltpu.MemorySpace.VMEM),
            ],
            out_specs=pl.BlockSpec((tb, fp), lambda i: (i, 0)),
        ),
        compiler_params=pltpu.CompilerParams(
            # Independent batch tiles: v7x can shard grid steps across its 2 TCs.
            dimension_semantics=("parallel",),
            # Raise the scoped VMEM limit (default is only 16/32 MiB) so tables that
            # fit the physical budget don't trip the compiler limit.
            vmem_limit_bytes=int(vmem_cap * 0.85),
        ),
    )(idx_p, table_p)
    return out[:b, :f]


# -----------------------------------------------------------------------------
# Path 2: large / non-float table -- rebatched manual-DMA row gather.
# -----------------------------------------------------------------------------
_GATHER_SEMS = 8  # DMA ring depth: number of row copies kept in flight per step


def _glo_gather_kernel(idx_smem_ref, table_hbm_ref, out_ref, sem_ref):
    # idx_smem_ref:  (B_pad,) int32 in SMEM (scalar-prefetched indices)
    # table_hbm_ref: (n, F) table in HBM (memory_space=pl.ANY)
    # out_ref:       (TB, F) output block in VMEM -- rows DMA'd straight into it
    # sem_ref:       (_GATHER_SEMS,) DMA semaphores (rolling ring)
    tb = out_ref.shape[0]
    base = pl.program_id(0) * tb

    def wait_slot(s):
        # All copies are one (1, F) row -> any (1, F) descriptor matches the wait size.
        pltpu.make_async_copy(
            table_hbm_ref.at[pl.ds(0, 1)], out_ref.at[pl.ds(0, 1)], sem_ref.at[s]
        ).wait()

    def body(r, carry):
        slot = r % _GATHER_SEMS

        @pl.when(r >= _GATHER_SEMS)
        def _():
            wait_slot(slot)            # free this ring slot before reusing it

        row = idx_smem_ref[base + r]   # data-dependent HBM row
        pltpu.make_async_copy(
            table_hbm_ref.at[pl.ds(row, 1)],
            out_ref.at[pl.ds(r, 1)],
            sem_ref.at[slot],
        ).start()
        return carry

    lax.fori_loop(0, tb, body, 0)

    # Drain the ring: every slot has at most one outstanding copy left.
    def drain(s, carry):
        wait_slot(s)
        return carry

    lax.fori_loop(0, min(_GATHER_SEMS, tb), drain, 0)


def _forward_gather(table, idx):
    n, f = table.shape
    b = idx.shape[0]
    tb = min(256, _round_up(b, 8))
    b_pad = _round_up(b, tb)
    idx_p = jnp.pad(idx, (0, b_pad - b))  # pad rows gather row 0; sliced off below

    out = pl.pallas_call(
        _glo_gather_kernel,
        out_shape=jax.ShapeDtypeStruct((b_pad, f), table.dtype),
        grid_spec=pltpu.PrefetchScalarGridSpec(
            num_scalar_prefetch=1,                     # indices live in SMEM
            grid=(b_pad // tb,),
            in_specs=[pl.BlockSpec(memory_space=pl.ANY)],   # table stays in HBM
            out_specs=pl.BlockSpec((tb, f), lambda i, idx_ref: (i, 0)),
            scratch_shapes=[pltpu.SemaphoreType.DMA((_GATHER_SEMS,))],
        ),
        compiler_params=pltpu.CompilerParams(
            # Each grid step writes a distinct output block -> safe to parallelize
            # across v7x's 2 TensorCores (2x DMA issue rate).
            dimension_semantics=("parallel",),
        ),
    )(idx_p, table)
    return out[:b]


# -----------------------------------------------------------------------------
# Public forward.
# -----------------------------------------------------------------------------
def glo_table_forward(table: jax.Array, idx, *, force_gather: bool = False) -> jax.Array:
    """Pallas equivalent of GLOTable.forward: returns table[idx].

    Accepts a python int (returns (1, F)) or a 1-D int array (returns (B, F)),
    matching the PyTorch module.  Out-of-range indices are clamped on both paths
    (PyTorch nn.Embedding would raise).
    """
    if isinstance(idx, int):
        idx = jnp.array([idx], dtype=jnp.int32)
    idx = jnp.asarray(idx, dtype=jnp.int32)
    assert idx.ndim == 1
    n, f = table.shape
    idx = jnp.clip(idx, 0, n - 1)

    vmem_cap = _vmem_capacity_bytes()
    itemsize = jnp.dtype(table.dtype).itemsize
    fp = _round_up(f, 128)
    sub = max(8, 32 // itemsize)
    n_pad = _round_up(n, sub)
    tb_est = 256
    vmem_est = (n_pad * fp * itemsize          # resident table (single buffer)
                + tb_est * n_pad * 4           # one-hot intermediate
                + 2 * tb_est * fp * itemsize   # output tiles (double-buffered)
                + tb_est * fp * 4)             # f32 matmul accumulator

    # Non-float tables must not hit the MXU path (v7x MXU is bf16/fp8 only).
    use_gather = (force_gather
                  or not jnp.issubdtype(table.dtype, jnp.floating)
                  or vmem_est > int(vmem_cap * 0.8))
    if use_gather:
        return _forward_gather(table, idx)
    return _forward_onehot(table, idx, vmem_cap=vmem_cap)


if __name__ == "__main__":
    key = jax.random.PRNGKey(0)
    k_w, k_i, k_w2, k_i2, k_i3 = jax.random.split(key, 5)

    # --- Test 1: module-sized shapes GLOTable(n=16, glo_features=32), batch=8 ---
    n, glo_features = 16, 32
    batch = 8
    table = jax.random.normal(k_w, (n, glo_features), dtype=jnp.float32)
    idx = jax.random.randint(k_i, (batch,), 0, n, dtype=jnp.int32)

    out = jax.block_until_ready(glo_table_forward(table, idx))
    assert out.shape == (batch, glo_features) and out.dtype == jnp.float32
    assert jnp.allclose(out, table[idx]), "one-hot path mismatch"

    # forward(idx: int) -> (1, glo_features)
    out_int = jax.block_until_ready(glo_table_forward(table, 3))
    assert out_int.shape == (1, glo_features)
    assert jnp.allclose(out_int, table[3:4])

    # --- Test 2: multi-tile batch on the one-hot path (2 grid steps, TB=1024) ---
    n2, batch2 = 64, 1200
    table2 = jax.random.normal(k_w2, (n2, glo_features), dtype=jnp.float32)
    idx2 = jax.random.randint(k_i2, (batch2,), 0, n2, dtype=jnp.int32)
    out2 = jax.block_until_ready(glo_table_forward(table2, idx2))
    assert out2.shape == (batch2, glo_features)
    assert jnp.allclose(out2, table2[idx2]), "tiled one-hot path mismatch"

    # --- Test 3: DMA gather path, single step (TB < ring depth edge case) ---
    out3 = jax.block_until_ready(glo_table_forward(table, idx, force_gather=True))
    assert jnp.allclose(out3, table[idx]), "gather path mismatch (small batch)"

    # --- Test 4: DMA gather path, multiple grid steps + rolling semaphore ring ---
    batch4 = 260
    idx4 = jax.random.randint(k_i3, (batch4,), 0, n2, dtype=jnp.int32)
    out4 = jax.block_until_ready(glo_table_forward(table2, idx4, force_gather=True))
    assert out4.shape == (batch4, glo_features)
    assert jnp.allclose(out4, table2[idx4]), "gather path mismatch (multi-step)"

    # TODO(synk): `interpolated`, `optimizer` (SparseAdam), `schedule` are training-side
    # utilities (softmax-weighted mixing / optimizer plumbing), not part of forward().
    print("KERNEL_OK")
</pallas_src>

<mosaic_0001>
module attributes {stable_mosaic.version = 11 : i64} {
  func.func @_glo_onehot_kernel(%arg0: i32, %arg1: memref<8x1xi32, #tpu.memory_space<vmem>>, %arg2: memref<16x128xf32, #tpu.memory_space<vmem>>, %arg3: memref<8x128xf32, #tpu.memory_space<vmem>>) attributes {dimension_semantics = [#tpu.dimension_semantics<parallel>], iteration_bounds = array<i64: 1>, scalar_prefetch = 0 : i64, scratch_operands = 0 : i64, tpu.core_type = #tpu.core_type<tc>, window_params = [{transform_indices = @transform_0, window_bounds = array<i64: 8, 1>}, {pipeline_mode = #tpu.pipeline_mode<synchronous>, transform_indices = @transform_1, window_bounds = array<i64: 16, 128>}, {transform_indices = @transform_2, window_bounds = array<i64: 8, 128>}]} {
    %0 = tpu.iota {dimensions = array<i32: 1>} : vector<8x16xi32>
    %c0 = arith.constant 0 : index
    %c0_0 = arith.constant 0 : index
    %1 = vector.load %arg1[%c0, %c0_0] : memref<8x1xi32, #tpu.memory_space<vmem>>, vector<8x1xi32>
    %2 = vector.broadcast %1 : vector<8x1xi32> to vector<8x16xi32>
    %3 = arith.cmpi eq, %0, %2 : vector<8x16xi32>
    %4 = arith.extui %3 : vector<8x16xi1> to vector<8x16xi32>
    %5 = arith.sitofp %4 : vector<8x16xi32> to vector<8x16xf32>
    %c0_1 = arith.constant 0 : index
    %c0_2 = arith.constant 0 : index
    %6 = vector.load %arg2[%c0_1, %c0_2] : memref<16x128xf32, #tpu.memory_space<vmem>>, vector<16x128xf32>
    %cst = arith.constant dense<0.000000e+00> : vector<8x128xf32>
    %7 = tpu.matmul %5, %6, %cst {dimension_numbers = #tpu.dot_dimension_numbers<[1], [0], [0], [1], [0, 0, 1, 1], [], []>, precision = #tpu.contract_precision<fp32>} : vector<8x16xf32>, vector<16x128xf32>, vector<8x128xf32> -> vector<8x128xf32>
    %c0_3 = arith.constant 0 : index
    %c0_4 = arith.constant 0 : index
    %8 = vector.load %arg3[%c0_3, %c0_4] : memref<8x128xf32, #tpu.memory_space<vmem>>, vector<8x128xf32>
    tpu.vector_store %arg3[%c0_3, %c0_4], %7 {strides = array<i32>} : memref<8x128xf32, #tpu.memory_space<vmem>>, vector<8x128xf32>,
    return
  }
  func.func @transform_0(%arg0: i32) -> (i32, i32) {
    %c0_i32 = arith.constant 0 : i32
    %c0_i32_0 = arith.constant 0 : i32
    return %arg0, %c0_i32 : i32, i32
  }
  func.func @transform_1(%arg0: i32) -> (i32, i32) {
    %c0_i32 = arith.constant 0 : i32
    %c0_i32_0 = arith.constant 0 : i32
    %c0_i32_1 = arith.constant 0 : i32
    return %c0_i32, %c0_i32_0 : i32, i32
  }
  func.func @transform_2(%arg0: i32) -> (i32, i32) {
    %c0_i32 = arith.constant 0 : i32
    %c0_i32_0 = arith.constant 0 : i32
    return %arg0, %c0_i32 : i32, i32
  }
}

</mosaic_0001>

<bundles_post_ra>
// kernel: tpu_custom_call.1
= control target key start
LH: loop header
LB: loop body
LE: loop exit
PB: predicated region body
PF: predicated region fallthrough
CT: control target
= control target key end

     0   :  { %7 = vsyncpa [#allocation3], 0  ;;  %s313_s0 = inlined_call_operand.vmem [shape: s32[8,1], index: 0, kind: input, shape index: {}]   ;;  %s314_s1 = inlined_call_operand.hbm [shape: f32[16,128], index: 1, kind: input, shape index: {}]   ;;  %s315_s2 = inlined_call_operand.hbm [shape: f32[8,128], index: 2, kind: output, shape index: {}]  }
   0x1   :  { %8 = vsyncpa [#allocation4], 0  ;;  %s15_s11 = sshll.u32 %s314_s1, 4  ;;  %s283_s12 = smov [#allocation2]   ;;  %s16_s11 = int_to_ptr.hbm [resolvable:$true] %s15_s11 }
   0x2   :  { %s17_s13 = sshll.u32 %s283_s12, 4  ;;  %s284_s14 = smov 128   ;;  %s18_s13 = int_to_ptr.vmem [resolvable:$true] %s17_s13 }
   0x3   :  { %s285_s15 = smov 8  }
   0x4   :  { %23 = dma.hbm_to_vmem [thread:$0]  %s16_s11, 256, %s18_s13, [#allocation3], %s284_s14, %s284_s14, %s285_s15  }
   0x5   :  { %279 = dma.done.wait [#allocation3], 256  }
   0x6   :  { %280 = vsyncadd [#allocation3], 4294967040  ;;  %v286_v0 = vmov 0   ;;  %v30_v1 = vld [vmem:[%s313_s0] sm:$0xff]  ;;  %v38_v2 = vld [vmem:[#allocation2 + $0x8] sm:$0xff]  ;;  %v28_v14 = vlaneseq  ;;  %vm39_vm0 = vcmask 130048  }
   0x7   :  { %230 = vset.pattern.permute.xlu0 %v286_v0  ;;  %v57_v3 = vand.u32 4294901760, %v38_v2  ;;  %v37_v8 = vld [vmem:[#allocation2] sm:$0xff]  ;;  %v287_v17 = vmov 0.0   ;;  %s288_s0 = smov [#allocation5]   ;;  %s210_s20 = sshll.u32 %s315_s2, 4  ;;  %s211_s20 = int_to_ptr.hbm [resolvable:$true] %s210_s20 }
   0x8   :  { %32 = vperm.xlu0 %230, %v30_v1   ;;  %v59_v9 = vand.u32 4294901760, %v37_v8  ;;  %v29_v15 = vand.u32 127, %v28_v14  ;;  %s208_s1 = sshll.u32 %s288_s0, 4  ;;  %s209_s1 = int_to_ptr.vmem [resolvable:$true] %s208_s1 }
   0x9   :  { %v85_v4 = vsub.f32 %v38_v2, %v57_v3  ;;  %142 = vmatpush.msra.mxu3 %v57_v3  ;;  %58 = vmatpush.msra.mxu0 %v57_v3 }
   0xa   :  { %v91_v10 = vsub.f32 %v37_v8, %v59_v9 }
   0xb   :  { %v86_v5 = vand.u32 4294901760, %v85_v4  ;;  %117 = vmatpush.msra.mxu2 %v85_v4  ;;  %144 = vmatpush.msra.mxu3 %v59_v9 }
   0xc   :  { %60 = vmatpush.msra.mxu0 %v59_v9  ;;  %v92_v11 = vand.u32 4294901760, %v91_v10 }
   0xd   :  { %v87_v6 = vsub.f32 %v85_v4, %v86_v5  ;;  %120 = vmatpush.msra.mxu2 %v91_v10 }
   0xe   :  { %169 = vmatpush.msrb.mxu0 %v86_v5  ;;  %v93_v12 = vsub.f32 %v91_v10, %v92_v11 }
   0xf   :  { %v88_v7 = vand.u32 4294901760, %v87_v6 }
  0x10   :  { %173 = vmatpush.msrb.mxu0 %v92_v11  ;;  %v94_v13 = vand.u32 4294901760, %v93_v12 }
  0x11   :  { %89 = vmatpush.msra.mxu1 %v88_v7 }
  0x13   :  { %95 = vmatpush.msra.mxu1 %v94_v13 }
  0x15   :  { %194 = vmatpush.msrb.mxu1 %v57_v3 }
  0x17   :  { %196 = vmatpush.msrb.mxu1 %v59_v9 }
  0x7a   :  { %v33_v16 = vpop.permute.xlu0 %32 }
  0x7b   :  { %vm34_vm1 = vcmp.eq.s32.totalorder %v29_v15, %v33_v16 }
  0x7c   :  { %v220_v18 = vsel %vm34_vm1, 1.0, %v287_v17 }
  0x7d   :  { %221 = vmatmul.msk.f32.vlgmr.msra.gmra.mxu1 %vm39_vm0, %v220_v18  ;;  %v41_v19 = vsel %vm39_vm0, %v220_v18, 0 }
  0x7e   :  { %v62_v20 = vsub.f32 %v41_v19, %v41_v19 }
  0x80   :  { %123 = vmatmul.f32.vlgmr.msra.gmra.mxu2 %v62_v20  ;;  %v63_v21 = vand.u32 4294901760, %v62_v20 }
  0x82   :  { %148 = vmatmul.f32.vlgmr.msra.gmra.mxu3 %v63_v21  ;;  %v64_v22 = vsub.f32 %v62_v20, %v63_v21 }
  0x84   :  { %v65_v23 = vand.u32 4294901760, %v64_v22 }
  0x85   :  { %223 = vmatmul.msk.f32.vlgmr.msrb.gmra.mxu1 %vm39_vm0, %v220_v18 }
  0x86   :  { %66 = vmatmul.f32.vlgmr.msra.gmra.mxu0 %v65_v23 }
  0x8e   :  { %222 = vmatmul.msk.f32.vlgmr.msrb.gmra.mxu0 %vm39_vm0, %v220_v18 }
  0xfa   :  { %v98_v24 = vpop.f32.mrf.mxu1 }
 0x102   :  { %v199_v33 = vpop.f32.mrf.mxu1 }
 0x103   :  { %v67_v25 = vpop.f32.mrf.mxu0  ;;  %v124_v27 = vpop.f32.mrf.mxu2 }
 0x104   :  { %v99_v26 = vadd.f32 %v98_v24, %v67_v25 }
 0x105   :  { %v149_v29 = vpop.f32.mrf.mxu3 }
 0x106   :  { %v125_v28 = vadd.f32 %v124_v27, %v99_v26 }
 0x108   :  { %v150_v30 = vadd.f32 %v149_v29, %v125_v28 }
 0x10b   :  { %v176_v31 = vpop.f32.mrf.mxu0 }
 0x10c   :  { %v177_v32 = vadd.f32 %v176_v31, %v150_v30 }
 0x10e   :  { %v200_v34 = vadd.f32 %v199_v33, %v177_v32 }
 0x110   :  { %202 = vst [vmem:[#allocation5] sm:$0xff] %v200_v34 }
 0x111   :  { %213 = dma.vmem_to_hbm [thread:$0]  %s209_s1, 128, %s211_s20, [#allocation4]  }
 0x112   :  { %281 = dma.done.wait [#allocation4], 128  }
 0x113   :  { %282 = vsyncadd [#allocation4], 4294967168 }
 0x114   :  { %218 = vsyncpa [#allocation3], 1 }
 0x115   :  { %219 = vsyncpa [#allocation4], 1 }

</bundles_post_ra>
